<compile_context>
chip_gen: v5e
topology: v5e:2x2
jax: 0.10.0
libtpu: 0.0.40
codegen_flags: <defaults>
</compile_context>

<pallas_src>
import functools

import jax
import jax.numpy as jnp
from jax.experimental import pallas as pl
from jax.experimental.pallas import tpu as pltpu

T_MAX = 1.0  # t_max of RegularizedInversedDynamics


def _reg_inv_dyn_kernel(t_ref, xT_ref, w1t_ref, b1_ref, w2t_ref, b2_ref,
                        dcoef_ref, ndxT_ref, stats_ref):
    """One batch tile, batch on the lane axis.

    t_ref    : [1]      f32 (SMEM)
    xT_ref   : [D, TB]  bf16   (state, transposed)
    w1t_ref  : [H, D]   bf16   (W1^T, resident)
    b1_ref   : [H, 1]   f32
    w2t_ref  : [D, H]   bf16   (W2^T, resident)
    b2_ref   : [D, 1]   f32
    dcoef_ref: [H, 1]   f32    (dcoef[h] = sum_i W1[i,h] W2[h,i])
    ndxT_ref : [D, TB]  f32    (-dx, transposed)
    stats_ref: [2, TB]  f32    (row 0 = -trace, row 1 = reg_term)
    """
    # --- time reversal: evaluate the wrapped dynamics at (t_max - t) ---
    tt = T_MAX - t_ref[0]

    xT = xT_ref[...]                                              # [D, TB]
    # pre = W1^T @ x + b1 + t : [H, TB]   (MXU bf16, f32 accumulate)
    pre = jnp.dot(w1t_ref[...], xT, preferred_element_type=jnp.float32)
    pre = pre + b1_ref[...] + tt                                  # lane-broadcast
    h = jnp.tanh(pre)                                             # EUP, f32

    # dx = W2^T @ h + b2 : [D, TB]
    dxT = jnp.dot(w2t_ref[...], h.astype(w2t_ref.dtype),
                  preferred_element_type=jnp.float32) + b2_ref[...]

    # Exact divergence on VPU + sublane reduce (avoid an N=1 MXU dot):
    #   trace = sum_h (1 - h^2) * dcoef[h]  : [1, TB]
    trace = jnp.sum((1.0 - h * h) * dcoef_ref[...], axis=0, keepdims=True)
    # Kinetic-energy regularizer ||f||^2 per sample : [1, TB]
    reg = jnp.sum(dxT * dxT, axis=0, keepdims=True)

    # Outputs of the *inversed* dynamics: negate dx and trace, pass reg through.
    ndxT_ref[...] = -dxT
    stats_ref[0:1, :] = -trace
    stats_ref[1:2, :] = reg


def _round_up(n, m):
    return ((n + m - 1) // m) * m


@functools.partial(jax.jit, static_argnames=("batch_tile",))
def regularized_inversed_dynamics(t, x, w1, b1, w2, b2, batch_tile=512):
    """Returns ([-dx, -trace], reg_term) like the PyTorch module."""
    B, D = x.shape
    H = w1.shape[1]

    # ---- parameter-only precompute + layout plumbing (wrapper glue) ----
    # diagonal Jacobian contraction coefficients for the exact divergence
    dcoef = jnp.sum(w1 * w2.T, axis=0).reshape(H, 1).astype(jnp.float32)
    w1t = w1.T.astype(jnp.bfloat16)                 # [H, D]
    w2t = w2.T.astype(jnp.bfloat16)                 # [D, H]
    b1c = b1.reshape(H, 1).astype(jnp.float32)
    b2c = b2.reshape(D, 1).astype(jnp.float32)
    t_arr = jnp.reshape(t, (1,)).astype(jnp.float32)

    # Batch on the lane axis; pad batch up to a multiple of the lane-dense tile.
    batch_tile = _round_up(batch_tile, 128)
    TB = min(batch_tile, _round_up(B, 128))
    Bp = _round_up(B, TB)
    xT = x.T.astype(jnp.bfloat16)                   # [D, B]
    if Bp != B:
        xT = jnp.pad(xT, ((0, 0), (0, Bp - B)))
    nb = Bp // TB

    smem = pl.BlockSpec(memory_space=pltpu.MemorySpace.SMEM)

    def resident(shape):
        # same block every grid step -> stays in VMEM, no re-DMA
        return pl.BlockSpec(shape, lambda i: (0, 0))

    ndxT, stats = pl.pallas_call(
        _reg_inv_dyn_kernel,
        out_shape=(
            jax.ShapeDtypeStruct((D, Bp), jnp.float32),   # -dx^T
            jax.ShapeDtypeStruct((2, Bp), jnp.float32),   # [-trace ; reg]
        ),
        grid_spec=pltpu.PrefetchScalarGridSpec(
            num_scalar_prefetch=0,
            grid=(nb,),
            in_specs=[
                smem,                                     # t (scalar, SMEM)
                pl.BlockSpec((D, TB), lambda i: (0, i)),  # x^T batch tile
                resident((H, D)),                         # W1^T
                resident((H, 1)),                         # b1
                resident((D, H)),                         # W2^T
                resident((D, 1)),                         # b2
                resident((H, 1)),                         # dcoef
            ],
            out_specs=(
                pl.BlockSpec((D, TB), lambda i: (0, i)),  # -dx^T tile
                pl.BlockSpec((2, TB), lambda i: (0, i)),  # packed stats tile
            ),
        ),
        compiler_params=pltpu.CompilerParams(
            dimension_semantics=("parallel",),            # megacore on v7x
            vmem_limit_bytes=32 * 1024 * 1024,            # ample headroom on 64 MiB v7x
        ),
    )(t_arr, xT, w1t, b1c, w2t, b2c, dcoef)

    # Back to the module-facing [B, D] / [B, 1] layout (wrapper glue).
    ndx = ndxT[:, :B].T                                   # [B, D]
    ntrace = stats[0, :B].reshape(B, 1)                   # [B, 1]
    reg = stats[1, :B].reshape(B, 1)                      # [B, 1]
    # match the PyTorch return structure: ([-dx, ..., -trace], reg_term)
    return ([ndx, ntrace], reg)


if __name__ == "__main__":
    key = jax.random.PRNGKey(0)
    kx, k1, k2, k3, k4 = jax.random.split(key, 5)

    B, D, H = 1024, 16, 32
    x = jax.random.normal(kx, (B, D), dtype=jnp.float32)
    w1 = 0.1 * jax.random.normal(k1, (D, H), dtype=jnp.float32)
    b1 = 0.1 * jax.random.normal(k2, (H,), dtype=jnp.float32)
    w2 = 0.1 * jax.random.normal(k3, (H, D), dtype=jnp.float32)
    b2 = 0.1 * jax.random.normal(k4, (D,), dtype=jnp.float32)
    t = jnp.float32(0.3)

    (neg_dx, neg_trace), reg = regularized_inversed_dynamics(t, x, w1, b1, w2, b2)
    jax.block_until_ready((neg_dx, neg_trace, reg))

    # pure-JAX f32 reference (kernel uses bf16 MXU operands -> loose tolerances)
    tt = T_MAX - t
    h_ref = jnp.tanh(x @ w1 + b1 + tt)
    dx_ref = h_ref @ w2 + b2
    tr_ref = (1.0 - h_ref ** 2) @ jnp.sum(w1 * w2.T, axis=0)[:, None]
    reg_ref = jnp.sum(dx_ref ** 2, axis=-1, keepdims=True)

    assert neg_dx.shape == (B, D) and neg_trace.shape == (B, 1) and reg.shape == (B, 1)
    assert jnp.allclose(neg_dx, -dx_ref, atol=5e-2), "dx mismatch"
    assert jnp.allclose(neg_trace, -tr_ref, atol=5e-2), "trace mismatch"
    assert jnp.allclose(reg, reg_ref, atol=5e-2, rtol=5e-2), "reg mismatch"

    print("KERNEL_OK")
</pallas_src>

<mosaic_0001>
module attributes {stable_mosaic.version = 11 : i64} {
  func.func @_reg_inv_dyn_kernel(%arg0: i32, %arg1: memref<1xf32, #tpu.memory_space<smem>>, %arg2: memref<16x512xbf16, #tpu.memory_space<vmem>>, %arg3: memref<32x16xbf16, #tpu.memory_space<vmem>>, %arg4: memref<32x1xf32, #tpu.memory_space<vmem>>, %arg5: memref<16x32xbf16, #tpu.memory_space<vmem>>, %arg6: memref<16x1xf32, #tpu.memory_space<vmem>>, %arg7: memref<32x1xf32, #tpu.memory_space<vmem>>, %arg8: memref<16x512xf32, #tpu.memory_space<vmem>>, %arg9: memref<2x512xf32, #tpu.memory_space<vmem>>) attributes {dimension_semantics = [#tpu.dimension_semantics<parallel>], iteration_bounds = array<i64: 2>, scalar_prefetch = 0 : i64, scratch_operands = 0 : i64, tpu.core_type = #tpu.core_type<tc>, window_params = [{transform_indices = @transform_0, window_bounds = array<i64: 1>}, {transform_indices = @transform_1, window_bounds = array<i64: 16, 512>}, {pipeline_mode = #tpu.pipeline_mode<synchronous>, transform_indices = @transform_2, window_bounds = array<i64: 32, 16>}, {pipeline_mode = #tpu.pipeline_mode<synchronous>, transform_indices = @transform_3, window_bounds = array<i64: 32, 1>}, {pipeline_mode = #tpu.pipeline_mode<synchronous>, transform_indices = @transform_4, window_bounds = array<i64: 16, 32>}, {pipeline_mode = #tpu.pipeline_mode<synchronous>, transform_indices = @transform_5, window_bounds = array<i64: 16, 1>}, {pipeline_mode = #tpu.pipeline_mode<synchronous>, transform_indices = @transform_6, window_bounds = array<i64: 32, 1>}, {transform_indices = @transform_7, window_bounds = array<i64: 16, 512>}, {transform_indices = @transform_8, window_bounds = array<i64: 2, 512>}]} {
    %c0 = arith.constant 0 : index
    %0 = memref.load %arg1[%c0] : memref<1xf32, #tpu.memory_space<smem>>
    %cst = arith.constant 1.000000e+00 : f32
    %1 = arith.subf %cst, %0 : f32
    %c0_0 = arith.constant 0 : index
    %c0_1 = arith.constant 0 : index
    %2 = vector.load %arg2[%c0_0, %c0_1] : memref<16x512xbf16, #tpu.memory_space<vmem>>, vector<16x512xbf16>
    %c0_2 = arith.constant 0 : index
    %c0_3 = arith.constant 0 : index
    %3 = vector.load %arg3[%c0_2, %c0_3] : memref<32x16xbf16, #tpu.memory_space<vmem>>, vector<32x16xbf16>
    %cst_4 = arith.constant dense<0.000000e+00> : vector<32x512xf32>
    %4 = tpu.matmul %3, %2, %cst_4 {dimension_numbers = #tpu.dot_dimension_numbers<[1], [0], [0], [1], [0, 0, 1, 1], [], []>} : vector<32x16xbf16>, vector<16x512xbf16>, vector<32x512xf32> -> vector<32x512xf32>
    %c0_5 = arith.constant 0 : index
    %c0_6 = arith.constant 0 : index
    %5 = vector.load %arg4[%c0_5, %c0_6] : memref<32x1xf32, #tpu.memory_space<vmem>>, vector<32x1xf32>
    %6 = vector.broadcast %5 : vector<32x1xf32> to vector<32x512xf32>
    %7 = arith.addf %4, %6 : vector<32x512xf32>
    %8 = vector.broadcast %1 : f32 to vector<32x512xf32>
    %9 = arith.addf %7, %8 : vector<32x512xf32>
    %10 = math.tanh %9 : vector<32x512xf32>
    %c0_7 = arith.constant 0 : index
    %c0_8 = arith.constant 0 : index
    %11 = vector.load %arg5[%c0_7, %c0_8] : memref<16x32xbf16, #tpu.memory_space<vmem>>, vector<16x32xbf16>
    %12 = arith.truncf %10 : vector<32x512xf32> to vector<32x512xbf16>
    %cst_9 = arith.constant dense<0.000000e+00> : vector<16x512xf32>
    %13 = tpu.matmul %11, %12, %cst_9 {dimension_numbers = #tpu.dot_dimension_numbers<[1], [0], [0], [1], [0, 0, 1, 1], [], []>} : vector<16x32xbf16>, vector<32x512xbf16>, vector<16x512xf32> -> vector<16x512xf32>
    %c0_10 = arith.constant 0 : index
    %c0_11 = arith.constant 0 : index
    %14 = vector.load %arg6[%c0_10, %c0_11] : memref<16x1xf32, #tpu.memory_space<vmem>>, vector<16x1xf32>
    %15 = vector.broadcast %14 : vector<16x1xf32> to vector<16x512xf32>
    %16 = arith.addf %13, %15 : vector<16x512xf32>
    %17 = arith.mulf %10, %10 : vector<32x512xf32>
    %cst_12 = arith.constant 1.000000e+00 : f32
    %18 = vector.broadcast %cst_12 : f32 to vector<32x512xf32>
    %19 = arith.subf %18, %17 : vector<32x512xf32>
    %c0_13 = arith.constant 0 : index
    %c0_14 = arith.constant 0 : index
    %20 = vector.load %arg7[%c0_13, %c0_14] : memref<32x1xf32, #tpu.memory_space<vmem>>, vector<32x1xf32>
    %21 = vector.broadcast %20 : vector<32x1xf32> to vector<32x512xf32>
    %22 = arith.mulf %19, %21 : vector<32x512xf32>
    %cst_15 = arith.constant dense<0.000000e+00> : vector<512xf32>
    %23 = vector.multi_reduction <add>, %22, %cst_15 [0] : vector<32x512xf32> to vector<512xf32>
    %24 = vector.shape_cast %23 : vector<512xf32> to vector<1x512xf32>
    %25 = arith.mulf %16, %16 : vector<16x512xf32>
    %cst_16 = arith.constant dense<0.000000e+00> : vector<512xf32>
    %26 = vector.multi_reduction <add>, %25, %cst_16 [0] : vector<16x512xf32> to vector<512xf32>
    %27 = vector.shape_cast %26 : vector<512xf32> to vector<1x512xf32>
    %cst_17 = arith.constant 0.000000e+00 : f32
    %28 = vector.broadcast %cst_17 : f32 to vector<16x512xf32>
    %29 = arith.subf %28, %16 : vector<16x512xf32>
    %c0_18 = arith.constant 0 : index
    %c0_19 = arith.constant 0 : index
    %30 = vector.load %arg8[%c0_18, %c0_19] : memref<16x512xf32, #tpu.memory_space<vmem>>, vector<16x512xf32>
    tpu.vector_store %arg8[%c0_18, %c0_19], %29 {strides = array<i32>} : memref<16x512xf32, #tpu.memory_space<vmem>>, vector<16x512xf32>,
    %cst_20 = arith.constant 0.000000e+00 : f32
    %31 = vector.broadcast %cst_20 : f32 to vector<1x512xf32>
    %32 = arith.subf %31, %24 : vector<1x512xf32>
    %c0_21 = arith.constant 0 : index
    %c0_22 = arith.constant 0 : index
    %33 = vector.load %arg9[%c0_21, %c0_22] : memref<2x512xf32, #tpu.memory_space<vmem>>, vector<1x512xf32>
    tpu.vector_store %arg9[%c0_21, %c0_22], %32 {strides = array<i32>} : memref<2x512xf32, #tpu.memory_space<vmem>>, vector<1x512xf32>,
    %c1 = arith.constant 1 : index
    %c0_23 = arith.constant 0 : index
    %34 = vector.load %arg9[%c1, %c0_23] : memref<2x512xf32, #tpu.memory_space<vmem>>, vector<1x512xf32>
    tpu.vector_store %arg9[%c1, %c0_23], %27 {strides = array<i32>} : memref<2x512xf32, #tpu.memory_space<vmem>>, vector<1x512xf32>,
    return
  }
  func.func @transform_0(%arg0: i32) -> i32 {
    %c0_i32 = arith.constant 0 : i32
    %c0_i32_0 = arith.constant 0 : i32
    return %c0_i32 : i32
  }
  func.func @transform_1(%arg0: i32) -> (i32, i32) {
    %c0_i32 = arith.constant 0 : i32
    %c0_i32_0 = arith.constant 0 : i32
    return %c0_i32, %arg0 : i32, i32
  }
  func.func @transform_2(%arg0: i32) -> (i32, i32) {
    %c0_i32 = arith.constant 0 : i32
    %c0_i32_0 = arith.constant 0 : i32
    %c0_i32_1 = arith.constant 0 : i32
    return %c0_i32, %c0_i32_0 : i32, i32
  }
  func.func @transform_3(%arg0: i32) -> (i32, i32) {
    %c0_i32 = arith.constant 0 : i32
    %c0_i32_0 = arith.constant 0 : i32
    %c0_i32_1 = arith.constant 0 : i32
    return %c0_i32, %c0_i32_0 : i32, i32
  }
  func.func @transform_4(%arg0: i32) -> (i32, i32) {
    %c0_i32 = arith.constant 0 : i32
    %c0_i32_0 = arith.constant 0 : i32
    %c0_i32_1 = arith.constant 0 : i32
    return %c0_i32, %c0_i32_0 : i32, i32
  }
  func.func @transform_5(%arg0: i32) -> (i32, i32) {
    %c0_i32 = arith.constant 0 : i32
    %c0_i32_0 = arith.constant 0 : i32
    %c0_i32_1 = arith.constant 0 : i32
    return %c0_i32, %c0_i32_0 : i32, i32
  }
  func.func @transform_6(%arg0: i32) -> (i32, i32) {
    %c0_i32 = arith.constant 0 : i32
    %c0_i32_0 = arith.constant 0 : i32
    %c0_i32_1 = arith.constant 0 : i32
    return %c0_i32, %c0_i32_0 : i32, i32
  }
  func.func @transform_7(%arg0: i32) -> (i32, i32) {
    %c0_i32 = arith.constant 0 : i32
    %c0_i32_0 = arith.constant 0 : i32
    return %c0_i32, %arg0 : i32, i32
  }
  func.func @transform_8(%arg0: i32) -> (i32, i32) {
    %c0_i32 = arith.constant 0 : i32
    %c0_i32_0 = arith.constant 0 : i32
    return %c0_i32, %arg0 : i32, i32
  }
}

</mosaic_0001>

<bundles_post_ra>
// kernel: regularized_inversed_dynamics.1
= control target key start
LH: loop header
LB: loop body
LE: loop exit
PB: predicated region body
PF: predicated region fallthrough
CT: control target
= control target key end

     0   :  { %s1445_s0 = inlined_call_operand.<no memory space> [shape: f32[1], index: 0, kind: input, shape index: {}]   ;;  %s1446_s1 = inlined_call_operand.vmem [shape: bf16[16,1024], index: 1, kind: input, shape index: {}]   ;;  %s1447_s2 = inlined_call_operand.vmem [shape: bf16[32,16], index: 2, kind: input, shape index: {}]   ;;  %s1448_s3 = inlined_call_operand.vmem [shape: f32[32,1], index: 3, kind: input, shape index: {}]   ;;  %s1449_s4 = inlined_call_operand.vmem [shape: bf16[16,32], index: 4, kind: input, shape index: {}]   ;;  %s1450_s5 = inlined_call_operand.vmem [shape: f32[16,1], index: 5, kind: input, shape index: {}]   ;;  %s1451_s6 = inlined_call_operand.vmem [shape: f32[32,1], index: 6, kind: input, shape index: {}]   ;;  %s1452_s7 = inlined_call_operand.hbm [shape: f32[16,1024], index: 7, kind: output, shape index: {0}]   ;;  %s1453_s8 = inlined_call_operand.vmem [shape: f32[2,1024], index: 8, kind: output, shape index: {1}]  }
   0x1   :  { %14 = sst [smem:[#allocation2]] %s1445_s0 }
   0x2   :  { %15 = vsyncpa [#allocation5], 0 }
   0x3   :  { %17 = vsyncpa [#allocation5 + $0x1], 0  ;;  %s1189_s29 = smov 0   ;;  %s1191_s30 = smov 0  }
   0x4   :  { %s1193_s9 = smov 0   ;;  %s1195_s10 = smov 0  }
   0x5 LB: > { %s1210_s0 = sadd.s32 4294967295, %s1135_s10   ;;  %s929_s11 = sadd.s32 4294967294, %s1135_s10   ;;  %s1135_s10 = sphi %s1195_s10, %s1461_s10   ;;  %s1131_s9 = sphi %s1193_s9, %s1460_s9   ;;  %s1127_s30 = sphi %s1191_s30, %s1459_s30   ;;  %s1123_s29 = sphi %s1189_s29, %s1458_s29  }
   0x6   : > { %s1214_s12 = sadd.s32 1, %s1135_s10   ;;  %s51_s13 = sadd.s32 1, %s1131_s9 }
   0x7   : > { %s48_s14 = ssub.s32 %s1135_s10, %s1214_s12  ;;  %p58_p0 = scmp.ne.s32.totalorder %s1131_s9, %s1127_s30 }
   0x8   : > { %p49_p1 = scmp.eq.s32.totalorder %s48_s14, 0  ;;  %p59_p2 = scmp.eq.s32.totalorder %s1135_s10, 0 }
   0x9   : > { %p193_p3 = scmp.eq.s32.totalorder %s1210_s0, 1  ;;  %p198_p4 = scmp.ne.s32.totalorder %s1127_s30, %s1123_s29 }
   0xa   : > { %s1226_s15 = scalar_select %p49_p1, %s1131_s9, %s51_s13  }
   0xb   : > { %p60_p5 = por %p59_p2, %p58_p0  ;;  %p1228_p6 = por %p193_p3, %p58_p0 }
   0xc   : > { %p199_p7 = scmp.eq.s32.totalorder %s929_s11, 1  ;;  %p931_p9 = scmp.ge.s32.totalorder %s1135_s10, 2 }
   0xe   : > { %p1232_p8 = por %p199_p7, %p198_p4  ;;  %259 = sbr.rel (%p931_p9) target bundleno = 27 (0x1b), region = 40 }
  0x13   : > { %262 = sbr.rel (!%p60_p5) target bundleno = 27 (0x1b), region = 44  ;;  %s264_s18 = sand.u32 (%p60_p5), 1, %s1131_s9  }
  0x14   : > { %s986_s19 = sshll.u32 (%p60_p5), %s1135_s10, 4  ;;  %s932_s20 = sshll.u32 (%p60_p5), %s264_s18, 5 }
  0x15   : > { %s269_s23 = scalar_lea.vmem (%p60_p5), %s1446_s1, %s986_s19  ;;  %s266_s24 = scalar_lea.vmem (%p60_p5), [#allocation3], %s932_s20 }
  0x16   : > { %v282_v0 = vld [vmem:[%s269_s23] sm:$0xff] (%p60_p5)  ;;  %v284_v1 = vld [vmem:[%s269_s23 + $0x8] sm:$0xff] (%p60_p5) }
  0x17   : > { %v286_v2 = vld [vmem:[%s269_s23 + $0x20] sm:$0xff] (%p60_p5)  ;;  %283 = vst [vmem:[%s266_s24] sm:$0xff] (%p60_p5), %v282_v0  ;;  %v288_v3 = vld [vmem:[%s269_s23 + $0x28] sm:$0xff] (%p60_p5) }
  0x18   : > { %285 = vst [vmem:[%s266_s24 + $0x8] sm:$0xff] %v284_v1 }
  0x19   : > { %287 = vst [vmem:[%s266_s24 + $0x10] sm:$0xff] %v286_v2 }
  0x1a   : > { %289 = vst [vmem:[%s266_s24 + $0x18] sm:$0xff] %v288_v3 }
  0x1b PF: > { %p935_p10 = scmp.ge.s32.totalorder %s1135_s10, 1  ;;  %p294_p11 = scmp.lt.s32.totalorder %s1135_s10, 3 }
  0x1d   : > { %p295_p12 = pnand %p935_p10, %p294_p11 }
  0x1e   : > { %s1247_s25 = sand.u32 (!%p295_p12), 1, %s1127_s30   ;;  %s348_s23 = sld [smem:[#allocation2]] (!%p295_p12) }
  0x1f   : > { %298 = sbr.rel (%p295_p12) target bundleno = 385 (0x181), region = 67  ;;  %s936_s13 = sshll.u32 (!%p295_p12), %s1247_s25, 5 }
  0x20   : > { %s303_s14 = scalar_lea.vmem (!%p295_p12), [#allocation3], %s936_s13  ;;  %s938_s13 = sshll.u32 (!%p295_p12), %s1210_s0, 2 }
  0x21   : > { %p342_p13 = scmp.lt.s32.totalorder (!%p295_p12), %s938_s13, 7  ;;  %s937_s21 = sshll.u32 (!%p295_p12), %s1247_s25, 6 }
  0x22   : > { %s1388_s22 = scalar_lea.vmem (!%p295_p12), [#allocation4], %s937_s21  ;;  %s1093_s21 = scalar_lea.hbm (!%p295_p12), %s1452_s7, 128 }
  0x23   : > { %s829_s28 = sshll.u32 (!%p295_p12), %s1388_s22, 4  ;;  %s1401_s28 = int_to_ptr.vmem [resolvable:$true] %s829_s28 }
  0x24   : > { %v360_v4 = vld [vmem:[%s1448_s3 + $0x10] sm:$0xff]  ;;  %v358_v5 = vld [vmem:[%s1448_s3] sm:$0xff]  ;;  %v1137_v6 = vmov 0   ;;  %v958_v13 = vld [vmem:[%s303_s14 + $0x8] sm:$0xf]  ;;  %vm412_vm0 = vcmask 130048  }
  0x25   : > { %1038 = vset.pattern.permute.xlu0 %v1137_v6  ;;  %1039 = vset.pattern.permute.xlu1 %v1137_v6  ;;  %v950_v7 = vld [vmem:[%s303_s14] sm:$0xf]  ;;  %v989_v8 = vld [vmem:[%s303_s14 + $0xc] sm:$0xf0]  ;;  %v987_v11 = vld [vmem:[%s303_s14 + $0x4] sm:$0xf] }
  0x26   : > { %374 = vperm.xlu0 %1038, %v360_v4   ;;  %364 = vperm.xlu1 %1039, %v358_v5   ;;  %v991_v9 = vld [vmem:[%s1447_s2] sm:$0xff]  ;;  %v951_v10 = vor.u32 %v989_v8, %v950_v7  ;;  %v952_v12 = vld [vmem:[%s303_s14 + $0x10] sm:$0xf0]  ;;  %v990_v15 = vld [vmem:[%s303_s14 + $0x14] sm:$0xf0]  ;;  %s349_s24 = ssub.f32 1.0, %s348_s23 }
  0x27   : > { %1040 = vset.pattern.permute.xlu2 %v1137_v6  ;;  %v955_v14 = vor.u32 %v987_v11, %v952_v12  ;;  %v988_v16 = vld [vmem:[%s303_s14 + $0xc] sm:$0xf]  ;;  %v960_v17 = vld [vmem:[%s303_s14 + $0x18] sm:$0xf0]  ;;  %v959_v18 = vor.u32 %v990_v15, %v958_v13  ;;  %v647_v20 = vld [vmem:[%s1451_s6] sm:$0xff]  ;;  %vm555_vm1 = vcmask 261120  }
  0x28   : > { %426 = vmatpush.bf16.msra.mxu0 %v951_v10  ;;  %v963_v19 = vor.u32 %v988_v16, %v960_v17  ;;  %v361_v21 = vld [vmem:[%s1448_s3 + $0x18] sm:$0xff]  ;;  %653 = vperm.xlu2 %1040, %v647_v20   ;;  %v359_v22 = vld [vmem:[%s1448_s3 + $0x8] sm:$0xff]  ;;  %v649_v24 = vld [vmem:[%s1451_s6 + $0x10] sm:$0xff]  ;;  %v1291_v36 = vstv %s349_s24  ;;  %s1463_s13 = smov (!%p342_p13, %s938_s13), 7  ;;  %vm786_vm2 = vcmask 1040384   ;;  %vm788_vm3 = vcmask 1042434  }
  0x29   : > { %445 = vmatpush.bf16.msra.mxu1 %v955_v14  ;;  %464 = vmatpush.bf16.msra.mxu2 %v959_v18  ;;  %v648_v23 = vld [vmem:[%s1451_s6 + $0x8] sm:$0xff]  ;;  %v538_v25 = vld [vmem:[%s1450_s5] sm:$0xff]  ;;  %v650_v27 = vld [vmem:[%s1451_s6 + $0x18] sm:$0xff]  ;;  %s939_s14 = sshll.u32 %s1463_s13, 1  ;;  %vm790_vm4 = vcmask 1041408   ;;  %s994_s23 = sshll.u32 %s1210_s0, 5 }
  0x2a   : > { %483 = vmatpush.bf16.msra.mxu3 %v963_v19  ;;  %v992_v26 = vld [vmem:[%s1447_s2 + $0x8] sm:$0xff]  ;;  %s1375_s20 = scalar_lea.vmem %s1453_s8, %s939_s14  ;;  %s828_s27 = scalar_lea.hbm %s1452_s7, %s994_s23 }
  0x2b   : > { %964 = vmatmul.msk.bf16.vlgmr.msra.gmra.mxu0 %vm412_vm0, %v991_v9  ;;  %s831_s11 = sshll.u32 %s828_s27, 4  ;;  %s812_s0 = scalar_lea.sflag [#allocation5], %s1247_s25  ;;  %s1403_s11 = int_to_ptr.hbm [resolvable:$true] %s831_s11 }
  0x2c   : > { %966 = vmatmul.msk.bf16.vlgmr.msra.gmra.mxu1 %vm412_vm0, %v991_v9  ;;  %968 = vmatmul.msk.bf16.vlgmr.msra.gmra.mxu2 %vm412_vm0, %v991_v9  ;;  %s1087_s13 = sshra.s32 %s1403_s11, 4  ;;  %s1088_s13 = int_to_ptr.hbm [resolvable:$true] %s1087_s13 }
  0x2d   : > { %970 = vmatmul.msk.bf16.vlgmr.msra.gmra.mxu3 %vm412_vm0, %v991_v9  ;;  %s1089_s14 = scalar_lea.hbm %s1088_s13, 64  ;;  %p1094_p3 = scmp.lt.s32.totalorder %s1088_s13, %s1452_s7 }
  0x2e   : > { %379 = vperm.xlu0 %1038, %v361_v21   ;;  %369 = vperm.xlu1 %1039, %v359_v22   ;;  %p1090_p0 = scmp.ne.s32.totalorder %s1088_s13, %s1089_s14  ;;  %p1095_p4 = scmp.lt.s32.totalorder %s1093_s21, %s1089_s14 }
  0x30   : > { %658 = vperm.xlu2 %1040, %v648_v23   ;;  %p1091_p1 = pnand %p1090_p0, %p1228_p6  ;;  %p1096_p5 = por %p1095_p4, %p1094_p3 }
  0x32   : > { %p1092_p2 = pneg %p1091_p1 }
  0x34   : > { %p1097_p7 = pnand %p1096_p5, %p1092_p2 }
  0x36   : > { %663 = vperm.xlu0 %1038, %v649_v24   ;;  %542 = vperm.xlu1 %1039, %v538_v25  }
  0x3b   : > { %965 = vmatmul.msk.bf16.gmra.mxu0 %vm412_vm0, %v992_v26 }
  0x3c   : > { %967 = vmatmul.msk.bf16.gmra.mxu1 %vm412_vm0, %v992_v26  ;;  %969 = vmatmul.msk.bf16.gmra.mxu2 %vm412_vm0, %v992_v26 }
  0x3d   : > { %971 = vmatmul.msk.bf16.gmra.mxu3 %vm412_vm0, %v992_v26 }
  0x3e   : > { %668 = vperm.xlu0 %1038, %v650_v27  }
  0x82   : > { %v1304_v63 = vpop.permute.xlu2 %653 }
  0x98   : > { %v365_v28 = vpop.permute.xlu1 %364  ;;  %v375_v41 = vpop.permute.xlu0 %374 }
  0xa0   : > { %v370_v32 = vpop.permute.xlu1 %369  ;;  %v380_v62 = vpop.permute.xlu0 %379 }
  0xa8   : > { %v428_v29 = vpop.f32.mrf.mxu0 }
  0xa9   : > { %v447_v30 = vpop.f32.mrf.mxu1  ;;  %v429_v31 = vadd.f32 %v428_v29, %v365_v28  ;;  %v1331_v29 = vpop.permute.xlu0 %663 }
  0xaa   : > { %v448_v35 = vadd.f32 %v447_v30, %v365_v28 }
  0xab   : > { %v496_v39 = vadd.f32 %v1291_v36, %v429_v31 }
  0xac   : > { %v497_v45 = vadd.f32 %v1291_v36, %v448_v35 }
  0xad   : > { %1041 = vtanh.f32 %v496_v39 }
  0xaf   : > { %v466_v33 = vpop.f32.mrf.mxu2 }
  0xb0   : > { %v485_v34 = vpop.f32.mrf.mxu3  ;;  %v430_v37 = vpop.f32.mrf.mxu0  ;;  %v467_v43 = vadd.f32 %v466_v33, %v365_v28 }
  0xb1   : > { %v449_v38 = vpop.f32.mrf.mxu1  ;;  %v431_v40 = vadd.f32 %v430_v37, %v370_v32  ;;  %v486_v46 = vadd.f32 %v485_v34, %v365_v28 }
  0xb2   : > { %v450_v42 = vadd.f32 %v449_v38, %v370_v32  ;;  %v498_v48 = vadd.f32 %v1291_v36, %v467_v43 }
  0xb3   : > { %v500_v44 = vadd.f32 %v1291_v36, %v431_v40  ;;  %v499_v51 = vadd.f32 %v1291_v36, %v486_v46  ;;  %v1300_v59 = vpop.eup %1041 }
  0xb4   : > { %v501_v47 = vadd.f32 %v1291_v36, %v450_v42  ;;  %v615_v3 = vmul.f32 %v1300_v59, %v1300_v59 }
  0xb5   : > { %1043 = vtanh.f32 %v500_v44 }
  0xb6   : > { %1045 = vtanh.f32 %v497_v45  ;;  %v631_v17 = vsub.f32 1.0, %v615_v3 }
  0xb7   : > { %v468_v49 = vpop.f32.mrf.mxu2  ;;  %1047 = vtanh.f32 %v501_v47 }
  0xb8   : > { %v487_v50 = vpop.f32.mrf.mxu3  ;;  %v469_v52 = vadd.f32 %v468_v49, %v370_v32  ;;  %v433_v53 = vpop.f32.mrf.mxu0  ;;  %1049 = vtanh.f32 %v498_v48  ;;  %v671_v31 = vmul.f32 %v1304_v63, %v631_v17 }
  0xb9   : > { %v452_v54 = vpop.f32.mrf.mxu1  ;;  %v488_v55 = vadd.f32 %v487_v50, %v370_v32  ;;  %v434_v56 = vadd.f32 %v433_v53, %v375_v41  ;;  %1051 = vtanh.f32 %v499_v51  ;;  %v659_v32 = vpop.permute.xlu2 %658  ;;  %v539_v51 = vld [vmem:[%s1450_s5 + $0x8] sm:$0xff] }
  0xba   : > { %v453_v57 = vadd.f32 %v452_v54, %v375_v41  ;;  %v502_v58 = vadd.f32 %v1291_v36, %v469_v52  ;;  %547 = vperm.xlu2 %1040, %v539_v51  }
  0xbb   : > { %v504_v60 = vadd.f32 %v1291_v36, %v434_v56  ;;  %v1306_v0 = vpop.eup %1043  ;;  %v503_v1 = vadd.f32 %v1291_v36, %v488_v55 }
  0xbc   : > { %v505_v61 = vadd.f32 %v1291_v36, %v453_v57  ;;  %1053 = vtanh.f32 %v502_v58  ;;  %v1309_v2 = vpop.eup %1045  ;;  %v619_v11 = vmul.f32 %v1306_v0, %v1306_v0 }
  0xbd   : > { %1055 = vtanh.f32 %v504_v60  ;;  %v1313_v6 = vpop.eup %1047  ;;  %v616_v13 = vmul.f32 %v1309_v2, %v1309_v2 }
  0xbe   : > { %1057 = vtanh.f32 %v505_v61  ;;  %v1317_v12 = vpop.eup %1049  ;;  %v620_v23 = vmul.f32 %v1313_v6, %v1313_v6  ;;  %v635_v25 = vsub.f32 1.0, %v619_v11  ;;  %v530_v11 = vpack.c.bf16 %v1306_v0, %v1300_v59  ;;  %v993_v0 = vld [vmem:[%s1449_s4] sm:$0xff] }
  0xbf   : > { %v471_v4 = vpop.f32.mrf.mxu2  ;;  %1059 = vtanh.f32 %v503_v1  ;;  %v1321_v16 = vpop.eup %1051  ;;  %v632_v28 = vsub.f32 1.0, %v616_v13  ;;  %v617_v34 = vmul.f32 %v1317_v12, %v1317_v12 }
  0xc0   : > { %v490_v5 = vpop.f32.mrf.mxu3  ;;  %v472_v7 = vadd.f32 %v471_v4, %v375_v41  ;;  %v435_v9 = vpop.f32.mrf.mxu0  ;;  %v618_v35 = vmul.f32 %v1321_v16, %v1321_v16  ;;  %v636_v37 = vsub.f32 1.0, %v620_v23 }
  0xc1   : > { %v491_v8 = vadd.f32 %v490_v5, %v375_v41  ;;  %v454_v10 = vpop.f32.mrf.mxu1  ;;  %v436_v14 = vadd.f32 %v435_v9, %v380_v62  ;;  %v675_v41 = vmul.f32 %v659_v32, %v635_v25  ;;  %v672_v45 = vmul.f32 %v1304_v63, %v632_v28  ;;  %v669_v13 = vpop.permute.xlu0 %668 }
  0xc2   : > { %v455_v15 = vadd.f32 %v454_v10, %v380_v62  ;;  %v506_v18 = vadd.f32 %v1291_v36, %v472_v7  ;;  %v1325_v20 = vpop.eup %1053  ;;  %v633_v53 = vsub.f32 1.0, %v617_v34  ;;  %v634_v54 = vsub.f32 1.0, %v618_v35 }
  0xc3   : > { %v507_v19 = vadd.f32 %v1291_v36, %v491_v8  ;;  %v508_v21 = vadd.f32 %v1291_v36, %v436_v14  ;;  %v1056_v24 = vpop.eup %1055  ;;  %v621_v40 = vmul.f32 %v1325_v20, %v1325_v20  ;;  %v676_v56 = vmul.f32 %v659_v32, %v636_v37 }
  0xc4   : > { %v509_v22 = vadd.f32 %v1291_v36, %v455_v15  ;;  %1061 = vtanh.f32 %v506_v18  ;;  %v1058_v26 = vpop.eup %1057  ;;  %v623_v27 = vmul.f32 %v1056_v24, %v1056_v24  ;;  %v687_v61 = vadd.f32 %v675_v41, %v671_v31 }
  0xc5   : > { %1063 = vtanh.f32 %v507_v19  ;;  %v624_v30 = vmul.f32 %v1058_v26, %v1058_v26  ;;  %v1334_v33 = vpop.eup %1059  ;;  %v637_v60 = vsub.f32 1.0, %v621_v40  ;;  %v696_v17 = vadd.f32 %v676_v56, %v672_v45 }
  0xc6   : > { %1065 = vtanh.f32 %v508_v21  ;;  %v639_v44 = vsub.f32 1.0, %v623_v27  ;;  %v622_v48 = vmul.f32 %v1334_v33, %v1334_v33  ;;  %v531_v18 = vpack.c.bf16 %v1313_v6, %v1309_v2 }
  0xc7   : > { %1067 = vtanh.f32 %v509_v22  ;;  %v473_v38 = vpop.f32.mrf.mxu2  ;;  %v640_v47 = vsub.f32 1.0, %v624_v30  ;;  %v673_v19 = vmul.f32 %v1304_v63, %v633_v53  ;;  %v677_v22 = vmul.f32 %v659_v32, %v637_v60 }
  0xc8   : > { %v492_v39 = vpop.f32.mrf.mxu3  ;;  %v474_v42 = vadd.f32 %v473_v38, %v380_v62  ;;  %v679_v3 = vmul.f32 %v1331_v29, %v639_v44  ;;  %v638_v5 = vsub.f32 1.0, %v622_v48  ;;  %v674_v25 = vmul.f32 %v1304_v63, %v634_v54 }
  0xc9   : > { %v493_v43 = vadd.f32 %v492_v39, %v380_v62  ;;  %v680_v7 = vmul.f32 %v1331_v29, %v640_v47 }
  0xca   : > { %v1062_v46 = vpop.eup %1061  ;;  %v510_v49 = vadd.f32 %v1291_v36, %v474_v42  ;;  %v688_v23 = vadd.f32 %v687_v61, %v679_v3  ;;  %v678_v27 = vmul.f32 %v659_v32, %v638_v5  ;;  %v705_v32 = vadd.f32 %v677_v22, %v673_v19 }
  0xcb   : > { %v511_v50 = vadd.f32 %v1291_v36, %v493_v43  ;;  %v1064_v52 = vpop.eup %1063  ;;  %v625_v55 = vmul.f32 %v1062_v46, %v1062_v46  ;;  %v697_v59 = vadd.f32 %v696_v17, %v680_v7 }
  0xcc   : > { %v1066_v57 = vpop.eup %1065  ;;  %v626_v58 = vmul.f32 %v1064_v52, %v1064_v52  ;;  %1069 = vtanh.f32 %v510_v49  ;;  %v714_v41 = vadd.f32 %v678_v27, %v674_v25  ;;  %v533_v49 = vpack.c.bf16 %v1334_v33, %v1321_v16 }
  0xcd   : > { %v1068_v62 = vpop.eup %1067  ;;  %v627_v1 = vmul.f32 %v1066_v57, %v1066_v57  ;;  %1071 = vtanh.f32 %v511_v50  ;;  %v534_v36 = vpack.c.bf16 %v1066_v57, %v1056_v24  ;;  %v641_v9 = vsub.f32 1.0, %v625_v55 }
  0xce   : > { %v628_v4 = vmul.f32 %v1068_v62, %v1068_v62  ;;  %v535_v8 = vpack.c.bf16 %v1068_v62, %v1058_v26  ;;  %v642_v14 = vsub.f32 1.0, %v626_v58 }
  0xcf   : > { %v643_v10 = vsub.f32 1.0, %v627_v1  ;;  %565 = vmatpush.bf16.msrb.mxu0 %v534_v36  ;;  %v681_v30 = vmul.f32 %v1331_v29, %v641_v9 }
  0xd0   : > { %v644_v15 = vsub.f32 1.0, %v628_v4  ;;  %579 = vmatpush.bf16.msrb.mxu1 %v535_v8  ;;  %v682_v34 = vmul.f32 %v1331_v29, %v642_v14  ;;  %v532_v29 = vpack.c.bf16 %v1325_v20, %v1317_v12 }
  0xd1   : > { %v683_v21 = vmul.f32 %v669_v13, %v643_v10  ;;  %v706_v44 = vadd.f32 %v705_v32, %v681_v30  ;;  %v793_v10 = vlaneseq }
  0xd2   : > { %v1070_v24 = vpop.eup %1069  ;;  %v684_v26 = vmul.f32 %v669_v13, %v644_v15  ;;  %v715_v47 = vadd.f32 %v714_v41, %v682_v34 }
  0xd3   : > { %v1072_v28 = vpop.eup %1071  ;;  %v689_v31 = vadd.f32 %v688_v23, %v683_v21  ;;  %v629_v2 = vmul.f32 %v1070_v24, %v1070_v24  ;;  %566 = vmatpush.bf16.msrb.mxu0 %v530_v11  ;;  %v536_v6 = vpack.c.bf16 %v1070_v24, %v1062_v46  ;;  %vm1377_vm5 = vcmp.lt.s32.totalorder %v793_v10, 512  ;;  %v543_v23 = vpop.permute.xlu1 %542 }
  0xd4   : > { %v698_v35 = vadd.f32 %v697_v59, %v684_v26  ;;  %v630_v37 = vmul.f32 %v1072_v28, %v1072_v28  ;;  %580 = vmatpush.bf16.msrb.mxu1 %v531_v18  ;;  %v537_v63 = vpack.c.bf16 %v1072_v28, %v1064_v52 }
  0xd5   : > { %v690_v38 = vrot.slane %v689_v31, 4  ;;  %v645_v39 = vsub.f32 1.0, %v629_v2  ;;  %593 = vmatpush.bf16.msrb.mxu2 %v536_v6 }
  0xd6   : > { %v699_v40 = vrot.slane %v698_v35, 4  ;;  %v646_v42 = vsub.f32 1.0, %v630_v37  ;;  %607 = vmatpush.bf16.msrb.mxu3 %v537_v63  ;;  %976 = vmatmul.msk.bf16.vlgmr.msrb.gmra.mxu0 %vm555_vm1, %v993_v0 }
  0xd7   : > { %v691_v43 = vadd.f32 %v690_v38, %v689_v31  ;;  %v685_v45 = vmul.f32 %v669_v13, %v645_v39  ;;  %977 = vmatmul.msk.bf16.vlgmr.msrb.gmra.mxu1 %vm555_vm1, %v993_v0 }
  0xd8   : > { %v700_v46 = vadd.f32 %v699_v40, %v698_v35  ;;  %v686_v48 = vmul.f32 %v669_v13, %v646_v42 }
  0xd9   : > { %v707_v50 = vadd.f32 %v706_v44, %v685_v45  ;;  %594 = vmatpush.bf16.msrb.mxu2 %v532_v29  ;;  %v692_v51 = vrot.slane %v691_v43, 2 }
  0xda   : > { %v701_v52 = vrot.slane %v700_v46, 2  ;;  %v716_v53 = vadd.f32 %v715_v47, %v686_v48  ;;  %608 = vmatpush.bf16.msrb.mxu3 %v533_v49 }
  0xdb   : > { %v708_v54 = vrot.slane %v707_v50, 4  ;;  %v693_v12 = vadd.f32 %v692_v51, %v691_v43 }
  0xdc   : > { %v702_v55 = vadd.f32 %v701_v52, %v700_v46  ;;  %v717_v56 = vrot.slane %v716_v53, 4  ;;  %978 = vmatmul.msk.bf16.vlgmr.msrb.gmra.mxu2 %vm555_vm1, %v993_v0 }
  0xdd   : > { %v709_v57 = vadd.f32 %v708_v54, %v707_v50  ;;  %979 = vmatmul.msk.bf16.vlgmr.msrb.gmra.mxu3 %vm555_vm1, %v993_v0  ;;  %v694_v62 = vrot.slane %v693_v12, 1 }
  0xde   : > { %v703_v20 = vrot.slane %v702_v55, 1  ;;  %v718_v58 = vadd.f32 %v717_v56, %v716_v53 }
  0xdf   : > { %v710_v60 = vrot.slane %v709_v57, 2  ;;  %v695_v7 = vadd.f32 %v694_v62, %v693_v12 }
  0xe0   : > { %v704_v16 = vadd.f32 %v703_v20, %v702_v55  ;;  %v719_v33 = vrot.slane %v718_v58, 2 }
  0xe1   : > { %v711_v61 = vadd.f32 %v710_v60, %v709_v57  ;;  %v775_v15 = vsub.f32 0.0, %v695_v7 }
  0xe2   : > { %v720_v1 = vadd.f32 %v719_v33, %v718_v58  ;;  %v776_v36 = vsub.f32 0.0, %v704_v16 }
  0xe3   : > { %v712_v3 = vrot.slane %v711_v61, 1 }
  0xe4   : > { %v721_v4 = vrot.slane %v720_v1, 1  ;;  %v783_v11 = vrot.slane %v776_v36, 7 }
  0xe5   : > { %v713_v5 = vadd.f32 %v712_v3, %v711_v61 }
  0xe6   : > { %v722_v8 = vadd.f32 %v721_v4, %v720_v1  ;;  %v787_v19 = vsel %vm786_vm2, %v775_v15, %v783_v11 }
  0xe7   : > { %v777_v9 = vsub.f32 0.0, %v713_v5 }
  0xe8   : > { %v778_v13 = vsub.f32 0.0, %v722_v8 }
  0xe9   : > { %v784_v14 = vrot.slane %v777_v9, 6 }
  0xea   : > { %v785_v17 = vrot.slane %v778_v13, 5 }
  0xec   : > { %v789_v21 = vsel %vm788_vm3, %v784_v14, %v785_v17 }
  0xed   : > { %v791_v22 = vsel %vm790_vm4, %v787_v19, %v789_v21 }
  0xee   : > { %797 = vst.msk [vmem:[%s1375_s20] ss:$2 sm:$0xf] %vm1377_vm5, %v791_v22 }
 0x114   : > { %v548_v28 = vpop.permute.xlu2 %547 }
 0x153   : > { %v568_v24 = vpop.f32.mrf.mxu0 }
 0x154   : > { %v569_v25 = vadd.f32 %v568_v24, %v543_v23  ;;  %v582_v26 = vpop.f32.mrf.mxu1 }
 0x155   : > { %v583_v27 = vadd.f32 %v582_v26, %v543_v23 }
 0x156   : > { %v759_v59 = vsub.f32 0.0, %v569_v25  ;;  %v723_v41 = vmul.f32 %v569_v25, %v569_v25 }
 0x157   : > { %v760_v0 = vsub.f32 0.0, %v583_v27  ;;  %v724_v35 = vmul.f32 %v583_v27, %v583_v27 }
 0x158   : > { %767 = vst [vmem:[%s1388_s22] sm:$0xff] %v759_v59 }
 0x159   : > { %768 = vst [vmem:[%s1388_s22 + $0x8] sm:$0xff] %v760_v0 }
 0x15b   : > { %v570_v30 = vpop.f32.mrf.mxu0 }
 0x15c   : > { %v571_v31 = vadd.f32 %v570_v30, %v548_v28  ;;  %v584_v2 = vpop.f32.mrf.mxu1 }
 0x15d   : > { %v585_v6 = vadd.f32 %v584_v2, %v548_v28 }
 0x15e   : > { %v763_v34 = vsub.f32 0.0, %v571_v31  ;;  %v727_v37 = vmul.f32 %v571_v31, %v571_v31 }
 0x15f   : > { %v728_v63 = vmul.f32 %v585_v6, %v585_v6  ;;  %v764_v38 = vsub.f32 0.0, %v585_v6  ;;  %v596_v32 = vpop.f32.mrf.mxu2 }
 0x160   : > { %771 = vst [vmem:[%s1388_s22 + $0x20] sm:$0xff] %v763_v34  ;;  %v597_v39 = vadd.f32 %v596_v32, %v543_v23  ;;  %v610_v40 = vpop.f32.mrf.mxu3  ;;  %v731_v45 = vadd.f32 %v727_v37, %v723_v41 }
 0x161   : > { %v738_v42 = vadd.f32 %v728_v63, %v724_v35  ;;  %772 = vst [vmem:[%s1388_s22 + $0x28] sm:$0xff] %v764_v38  ;;  %v611_v43 = vadd.f32 %v610_v40, %v543_v23 }
 0x162   : > { %v761_v44 = vsub.f32 0.0, %v597_v39  ;;  %v732_v48 = vrot.slane %v731_v45, 4  ;;  %v725_v54 = vmul.f32 %v597_v39, %v597_v39 }
 0x163   : > { %v739_v29 = vrot.slane %v738_v42, 4  ;;  %v762_v46 = vsub.f32 0.0, %v611_v43  ;;  %v726_v12 = vmul.f32 %v611_v43, %v611_v43 }
 0x164   : > { %769 = vst [vmem:[%s1388_s22 + $0x10] sm:$0xff] %v761_v44  ;;  %v733_v57 = vadd.f32 %v732_v48, %v731_v45 }
 0x165   : > { %v740_v47 = vadd.f32 %v739_v29, %v738_v42  ;;  %770 = vst [vmem:[%s1388_s22 + $0x18] sm:$0xff] %v762_v46 }
 0x167   : > { %v598_v49 = vpop.f32.mrf.mxu2  ;;  %v741_v52 = vrot.slane %v740_v47, 2 }
 0x168   : > { %v599_v50 = vadd.f32 %v598_v49, %v548_v28  ;;  %v612_v51 = vpop.f32.mrf.mxu3 }
 0x169   : > { %v613_v53 = vadd.f32 %v612_v51, %v548_v28  ;;  %v742_v16 = vadd.f32 %v741_v52, %v740_v47 }
 0x16a   : > { %v729_v55 = vmul.f32 %v599_v50, %v599_v50  ;;  %v765_v56 = vsub.f32 0.0, %v599_v50 }
 0x16b   : > { %v730_v20 = vmul.f32 %v613_v53, %v613_v53  ;;  %v766_v58 = vsub.f32 0.0, %v613_v53 }
 0x16c   : > { %v745_v60 = vadd.f32 %v729_v55, %v725_v54  ;;  %773 = vst [vmem:[%s1388_s22 + $0x30] sm:$0xff] %v765_v56 }
 0x16d   : > { %v752_v33 = vadd.f32 %v730_v20, %v726_v12  ;;  %774 = vst [vmem:[%s1388_s22 + $0x38] sm:$0xff] %v766_v58 }
 0x16e   : > { %v746_v61 = vrot.slane %v745_v60, 4 }
 0x16f   : > { %1100 = shalt.err (!%p1097_p7)
}
 0x170   : > { %s1138_s25 = smov 512   ;;  %s1139_s22 = smov 1024   ;;  %v734_v62 = vrot.slane %v733_v57, 2  ;;  %v753_v1 = vrot.slane %v752_v33, 4  ;;  %v747_v3 = vadd.f32 %v746_v61, %v745_v60  ;;  %v743_v36 = vrot.slane %v742_v16, 1 }
 0x171   : > { %s1140_s26 = smov 32  }
 0x172   : > { %995 = dma.vmem_to_hbm [thread:$0]  (%p1228_p6), %s1401_s28, 1024, %s1403_s11, %s812_s0, %s1138_s25, %s1139_s22, %s1140_s26   ;;  %v754_v4 = vadd.f32 %v753_v1, %v752_v33  ;;  %v748_v5 = vrot.slane %v747_v3, 2  ;;  %v735_v7 = vadd.f32 %v734_v62, %v733_v57  ;;  %v744_v10 = vadd.f32 %v743_v36, %v742_v16 }
 0x174   : > { %v755_v8 = vrot.slane %v754_v4, 2  ;;  %v749_v9 = vadd.f32 %v748_v5, %v747_v3  ;;  %v736_v14 = vrot.slane %v735_v7, 1  ;;  %v802_v19 = vrot.slane %v744_v10, 7 }
 0x176   : > { %v756_v11 = vadd.f32 %v755_v8, %v754_v4  ;;  %v750_v13 = vrot.slane %v749_v9, 1  ;;  %v737_v23 = vadd.f32 %v736_v14, %v735_v7 }
 0x178   : > { %v757_v15 = vrot.slane %v756_v11, 1  ;;  %v751_v17 = vadd.f32 %v750_v13, %v749_v9  ;;  %v805_v25 = vsel %vm786_vm2, %v737_v23, %v802_v19 }
 0x17a   : > { %v758_v21 = vadd.f32 %v757_v15, %v756_v11  ;;  %v803_v22 = vrot.slane %v751_v17, 6 }
 0x17c   : > { %v804_v24 = vrot.slane %v758_v21, 5 }
 0x17e   : > { %v806_v26 = vsel %vm788_vm3, %v803_v22, %v804_v24 }
 0x17f   : > { %v807_v27 = vsel %vm790_vm4, %v805_v25, %v806_v26 }
 0x180   : > { %980 = vst.msk [vmem:[%s1375_s20 + $0x1] ss:$2 sm:$0xf] %vm1377_vm5, %v807_v27 }
 0x181 PF: > { %s850_s16 = sand.u32 1, %s1123_s29   ;;  %p998_p6 = pnand %p931_p9, %p1232_p8 }
 0x182   : > { %s851_s27 = scalar_lea.sflag [#allocation5], %s850_s16 }
 0x183   : > { %p999_p10 = pneg %p998_p6 }
 0x185   : > { %1118 = dma.done.wait (%p999_p10), %s851_s27, 1024  }
 0x186   : > { %1120 = vsyncadd (%p999_p10), %s851_s27, 4294966272  ;;  %p20_p11 = scmp.ge.s32.totalorder %s1214_s12, 4   ;;  %s1458_s29 = smov %s1127_s30 }
 0x187   : > { %s1459_s30 = smov %s1131_s9  ;;  %s1460_s9 = smov %s1226_s15 }
 0x188   : > { %s1461_s10 = smov %s1214_s12  ;;  %22 = sbr.rel (!%p20_p11) target bundleno = 5 (0x5), region = 124 }
 0x18d   :  { %865 = vsyncpa [#allocation5], 1 }
 0x18e   :  { %867 = vsyncpa [#allocation5 + $0x1], 1 }

</bundles_post_ra>
